<compile_context>
chip_gen: v6e
topology: v6e:2x2x1
jax: 0.10.0
libtpu: 0.0.40
codegen_flags: <defaults>
</compile_context>

<pallas_src>
import functools

import jax
import jax.numpy as jnp
from jax import lax
from jax.experimental import pallas as pl
from jax.experimental.pallas import tpu as pltpu


# ----------------------------------- kernel ------------------------------------------
def inception_kernel(
    x_ref,                      # (rows, Cin)  bf16, rows = B_blk * L (flattened batch*length)
    wA_ref, sA_ref, bA_ref,     # stage 1 fused 1x1s: (Cin, out1+red2+red3) bf16, (1,CA) f32 x2
    wB_ref, sB_ref, bB_ref,     # stage 2 block-diag:  (3*red2+5*red3+Cin, out3+out5+outp) bf16
    o_ref,                      # (rows, out1+out3+out5+outp) f32
    *, L, out1, red2, red3, use_roll,
):
    x = x_ref[...]                                   # (rows, Cin) bf16
    rows = x.shape[0]

    def shift_rows(v, d, edge_fill):
        """result[r] = v[r + d] when row r+d lies in the same length-L sample as row r;
        out-of-sample positions get the edge row itself (edge_fill=True, neutral under max)
        or zero (conv zero padding)."""
        if d == 0:
            return v
        if use_roll:
            shifted = pltpu.roll(v, (-d) % rows, axis=0)        # XLU sublane rotate
        else:
            shifted = jnp.concatenate([v[d:], v[:d]], axis=0)   # == roll by -d (proven path)
        pos = lax.broadcasted_iota(jnp.int32, v.shape, 0) % L   # within-sample position
        valid = jnp.logical_and(pos + d >= 0, pos + d < L)
        return jnp.where(valid, shifted, v if edge_fill else jnp.zeros_like(v))

    def bn_relu(y, s_ref, b_ref):
        return jnp.maximum(y * s_ref[...] + b_ref[...], 0.0)    # f32 epilogue

    # ---- stage 1: branch1 1x1 + both reduce 1x1s fused into ONE matmul over x -----------
    yA = bn_relu(jnp.dot(x, wA_ref[...], preferred_element_type=jnp.float32),
                 sA_ref, bA_ref)                                # (rows, out1+red2+red3) f32
    y1 = yA[:, :out1]
    r2 = yA[:, out1:out1 + red2]
    r3 = yA[:, out1 + red2:out1 + red2 + red3]

    # ---- branch4 pre-stage: MaxPool2d(3, stride=1, pad=1) over (channel, length) --------
    # (the PyTorch module feeds a 3-D (N, C, L) tensor to MaxPool2d, so the pool runs over
    #  the *channel* and length axes.)  Edge rows/lanes reuse the edge element, which is
    #  neutral under max (== -inf padding).  Compares in f32 (v5e has no bf16 VALU).
    xf = x.astype(jnp.float32)
    cm = jnp.concatenate([xf[:, :1], xf[:, :-1]], axis=1)       # channel-1 neighbour
    cp = jnp.concatenate([xf[:, 1:], xf[:, -1:]], axis=1)       # channel+1 neighbour
    pc = jnp.maximum(xf, jnp.maximum(cm, cp))                   # channel-direction max
    pooled = jnp.maximum(pc, jnp.maximum(shift_rows(pc, -1, True),
                                         shift_rows(pc, +1, True)))

    # ---- stage 2: ONE block-diagonal matmul for {3-tap conv, 5-tap conv, pooled 1x1} ----
    # column order = k-major im2col taps, matching the (K, I, O) -> (K*I, O) weight reshape.
    cols = jnp.concatenate(
        [shift_rows(r2, d, False) for d in (-1, 0, 1)]
        + [shift_rows(r3, d, False) for d in (-2, -1, 0, 1, 2)]
        + [pooled],
        axis=1,
    )                                                            # (rows, 3*red2+5*red3+Cin)
    yB = bn_relu(jnp.dot(cols.astype(jnp.bfloat16), wB_ref[...],
                         preferred_element_type=jnp.float32),
                 sB_ref, bB_ref)                                 # (rows, out3+out5+outp) f32

    # ---- write branch outputs directly into the lane-dense output block -----------------
    # channel order b1, b2, b3, b4 == torch.cat order
    o_ref[:, :out1] = y1
    o_ref[:, out1:] = yB


# --------------------------------- wrapper helpers ------------------------------------
@functools.lru_cache(maxsize=None)
def _roll_supported():
    """One-time probe: pltpu.roll (XLU sublane rotate) lowering + semantics on this backend.
    Falls back to the numerically identical slice+concat shift path if unavailable."""
    def k(x_ref, o_ref):
        o_ref[...] = pltpu.roll(x_ref[...], 3, axis=0)

    x = jnp.arange(16 * 4, dtype=jnp.float32).reshape(16, 4)
    try:
        y = pl.pallas_call(k, out_shape=jax.ShapeDtypeStruct((16, 4), jnp.float32))(x)
        return bool(jnp.array_equal(y, jnp.roll(x, 3, axis=0)))
    except Exception:
        return False


def _pick_batch_block(N, L, max_rows=2048):
    """Largest batch block that divides N, keeps the per-step row count bounded, keeps the
    row block a multiple of 8 sublanes, and (when possible) leaves >=2 grid steps so a v7x
    chip can shard the parallel axis over both TensorCores."""
    candidates = [b for b in range(1, N + 1)
                  if N % b == 0 and b * L <= max_rows and (b * L) % 8 == 0]
    two_step = [b for b in candidates if N // b >= 2]
    if two_step:
        return max(two_step)
    if candidates:
        return max(candidates)
    return N   # single full-array block: always a legal BlockSpec


def inception_block_pallas(x_ncl, p1, p2a, p2b, p3a, p3b, p4):
    """x_ncl: (N, C, L) float32, PyTorch Conv1d layout. Returns (N, C_out_total, L)."""
    N, Cin, L = x_ncl.shape

    out1 = p1["w_k"].shape[-1]
    red2 = p2a["w_k"].shape[-1]
    red3 = p3a["w_k"].shape[-1]
    out3 = p2b["w_k"].shape[-1]
    out5 = p3b["w_k"].shape[-1]
    outp = p4["w_k"].shape[-1]
    ctot = out1 + out3 + out5 + outp

    # (N, C, L) -> flattened NLC rows, cast to bf16 in the wrapper (halves the input DMA;
    # every matmul consumes bf16 anyway and max commutes with the monotone cast).
    x_rows = jnp.transpose(x_ncl, (0, 2, 1)).reshape(N * L, Cin).astype(jnp.bfloat16)

    # stage-1 fused weights (branch1 + both reduce 1x1s share the same input)
    wA = jnp.concatenate([p1["w_k"], p2a["w_k"], p3a["w_k"]], axis=1).astype(jnp.bfloat16)
    sA = jnp.concatenate([p1["s_k"], p2a["s_k"], p3a["s_k"]], axis=1)
    bA = jnp.concatenate([p1["b_k"], p2a["b_k"], p3a["b_k"]], axis=1)

    # stage-2 block-diagonal weight: one MXU push for {3-tap conv, 5-tap conv, pooled 1x1}.
    # Rows are k-major im2col taps (matches the (K, I, O) -> (K*I, O) reshape used in-kernel).
    kin2, kin3 = 3 * red2, 5 * red3
    kin = kin2 + kin3 + Cin
    coutB = out3 + out5 + outp
    wB = jnp.zeros((kin, coutB), jnp.float32)
    wB = wB.at[:kin2, :out3].set(p2b["w_k"].reshape(kin2, out3))
    wB = wB.at[kin2:kin2 + kin3, out3:out3 + out5].set(p3b["w_k"].reshape(kin3, out5))
    wB = wB.at[kin2 + kin3:, out3 + out5:].set(p4["w_k"])
    wB = wB.astype(jnp.bfloat16)
    sB = jnp.concatenate([p2b["s_k"], p3b["s_k"], p4["s_k"]], axis=1)
    bB = jnp.concatenate([p2b["b_k"], p3b["b_k"], p4["b_k"]], axis=1)

    b_blk = _pick_batch_block(N, L)
    rows = b_blk * L
    use_roll = (rows % 8 == 0) and _roll_supported()

    weights = [wA, sA, bA, wB, sB, bB]
    kernel = functools.partial(inception_kernel, L=L, out1=out1, red2=red2, red3=red3,
                               use_roll=use_roll)

    out_rows = pl.pallas_call(
        kernel,
        out_shape=jax.ShapeDtypeStruct((N * L, ctot), jnp.float32),
        grid=(N // b_blk,),
        in_specs=[pl.BlockSpec((rows, Cin), lambda n: (n, 0))]
                 + [pl.BlockSpec(w.shape, lambda n: (0, 0)) for w in weights],
        out_specs=pl.BlockSpec((rows, ctot), lambda n: (n, 0)),
        compiler_params=pltpu.CompilerParams(
            # batch blocks are independent -> lets v7x shard the grid over its 2 TensorCores
            dimension_semantics=("parallel",),
            # raise v5e's 16 MiB scoped default; stays within v7x's 64 MiB physical budget
            vmem_limit_bytes=32 * 1024 * 1024,
        ),
    )(x_rows, *weights)

    return jnp.transpose(out_rows.reshape(N, L, ctot), (0, 2, 1))   # back to PyTorch NCL


# ----------------------- deterministic parameter init --------------------------------
def make_convblock_params(key, cin, cout, k):
    ks = jax.random.split(key, 6)
    w_pt = jax.random.normal(ks[0], (cout, cin, k), jnp.float32) * 0.1   # PyTorch (O, I, K)
    conv_b = jax.random.normal(ks[1], (cout,), jnp.float32) * 0.1
    gamma = jax.random.uniform(ks[2], (cout,), jnp.float32, minval=0.5, maxval=1.5)
    beta = jax.random.normal(ks[3], (cout,), jnp.float32) * 0.1
    r_mean = jax.random.normal(ks[4], (cout,), jnp.float32) * 0.1
    r_var = jax.random.uniform(ks[5], (cout,), jnp.float32, minval=0.5, maxval=1.5)
    eps = 1e-5
    scale = gamma / jnp.sqrt(r_var + eps)                  # eval-mode BN fold
    bias = beta + (conv_b - r_mean) * scale
    w_kio = jnp.transpose(w_pt, (2, 1, 0))                 # (K, I, O) for the kernel
    return {
        "w_k": w_kio[0] if k == 1 else w_kio,              # 1x1 -> (I, O), else (K, I, O)
        "s_k": scale.reshape(1, cout),
        "b_k": bias.reshape(1, cout),
        "w_pt": w_pt, "scale": scale, "bias": bias,
    }


# ----------------------- pure-JAX reference (for verification) ------------------------
def _convblock_ref(x_ncl, p, pad):
    dn = lax.conv_dimension_numbers(x_ncl.shape, p["w_pt"].shape, ("NCH", "OIH", "NCH"))
    y = lax.conv_general_dilated(
        x_ncl, p["w_pt"], (1,), [(pad, pad)],
        dimension_numbers=dn, precision=lax.Precision.HIGHEST,
    )
    y = y * p["scale"][None, :, None] + p["bias"][None, :, None]
    return jnp.maximum(y, 0.0)


def inception_block_ref(x_ncl, p1, p2a, p2b, p3a, p3b, p4):
    b1 = _convblock_ref(x_ncl, p1, 0)
    b2 = _convblock_ref(_convblock_ref(x_ncl, p2a, 0), p2b, 1)
    b3 = _convblock_ref(_convblock_ref(x_ncl, p3a, 0), p3b, 2)
    pooled = lax.reduce_window(
        x_ncl, -jnp.inf, lax.max,
        window_dimensions=(1, 3, 3), window_strides=(1, 1, 1),
        padding=((0, 0), (1, 1), (1, 1)),
    )
    b4 = _convblock_ref(pooled, p4, 0)
    return jnp.concatenate([b1, b2, b3, b4], axis=1)


if __name__ == "__main__":
    # small shapes consistent with the module: InceptionBlock(4, 8, 4, 8, 8, 4) on (N=2, C=4, L=16)
    in_channels, out_1x1, red_1x1, out_3x3, out_5x5, out_pool = 4, 8, 4, 8, 8, 4
    N, L = 2, 16

    key = jax.random.PRNGKey(0)
    kx, k1, k2a, k2b, k3a, k3b, k4 = jax.random.split(key, 7)
    x = jax.random.normal(kx, (N, in_channels, L), jnp.float32)

    p1 = make_convblock_params(k1, in_channels, out_1x1, 1)
    p2a = make_convblock_params(k2a, in_channels, red_1x1, 1)
    p2b = make_convblock_params(k2b, red_1x1, out_3x3, 3)
    p3a = make_convblock_params(k3a, in_channels, red_1x1, 1)
    p3b = make_convblock_params(k3b, red_1x1, out_5x5, 5)
    p4 = make_convblock_params(k4, in_channels, out_pool, 1)

    out = inception_block_pallas(x, p1, p2a, p2b, p3a, p3b, p4)
    out = jax.block_until_ready(out)

    ref = inception_block_ref(x, p1, p2a, p2b, p3a, p3b, p4)
    assert out.shape == (N, out_1x1 + out_3x3 + out_5x5 + out_pool, L), out.shape
    # kernel matmul inputs are bf16 (f32 accumulation), reference is full f32 -> loosened tol
    assert jnp.allclose(out, ref, atol=1e-2, rtol=1e-2), float(jnp.max(jnp.abs(out - ref)))

    print("KERNEL_OK")
</pallas_src>

<mosaic_0001>
module attributes {stable_mosaic.version = 11 : i64} {
  func.func @k(%arg0: memref<16x4xf32, #tpu.memory_space<vmem>>, %arg1: memref<16x4xf32, #tpu.memory_space<vmem>>) attributes {dimension_semantics = [], scalar_prefetch = 0 : i64, scratch_operands = 0 : i64, tpu.core_type = #tpu.core_type<tc>} {
    %c0 = arith.constant 0 : index
    %c0_0 = arith.constant 0 : index
    %0 = vector.load %arg0[%c0, %c0_0] : memref<16x4xf32, #tpu.memory_space<vmem>>, vector<16x4xf32>
    %c3_i32 = arith.constant 3 : i32
    %1 = tpu.dynamic_rotate %0 by %c3_i32 dim 0 : vector<16x4xf32>, i32 -> vector<16x4xf32>
    %c0_1 = arith.constant 0 : index
    %c0_2 = arith.constant 0 : index
    %2 = vector.load %arg1[%c0_1, %c0_2] : memref<16x4xf32, #tpu.memory_space<vmem>>, vector<16x4xf32>
    tpu.vector_store %arg1[%c0_1, %c0_2], %1 {strides = array<i32>} : memref<16x4xf32, #tpu.memory_space<vmem>>, vector<16x4xf32>,
    return
  }
}

module attributes {stable_mosaic.version = 11 : i64} {
  func.func @inception_kernel(%arg0: i32, %arg1: memref<16x4xbf16, #tpu.memory_space<vmem>>, %arg2: memref<4x16xbf16, #tpu.memory_space<vmem>>, %arg3: memref<1x16xf32, #tpu.memory_space<vmem>>, %arg4: memref<1x16xf32, #tpu.memory_space<vmem>>, %arg5: memref<36x20xbf16, #tpu.memory_space<vmem>>, %arg6: memref<1x20xf32, #tpu.memory_space<vmem>>, %arg7: memref<1x20xf32, #tpu.memory_space<vmem>>, %arg8: memref<16x28xf32, #tpu.memory_space<vmem>>) attributes {dimension_semantics = [#tpu.dimension_semantics<parallel>], iteration_bounds = array<i64: 2>, scalar_prefetch = 0 : i64, scratch_operands = 0 : i64, tpu.core_type = #tpu.core_type<tc>, window_params = [{transform_indices = @transform_0, window_bounds = array<i64: 16, 4>}, {pipeline_mode = #tpu.pipeline_mode<synchronous>, transform_indices = @transform_1, window_bounds = array<i64: 4, 16>}, {pipeline_mode = #tpu.pipeline_mode<synchronous>, transform_indices = @transform_2, window_bounds = array<i64: 1, 16>}, {pipeline_mode = #tpu.pipeline_mode<synchronous>, transform_indices = @transform_3, window_bounds = array<i64: 1, 16>}, {pipeline_mode = #tpu.pipeline_mode<synchronous>, transform_indices = @transform_4, window_bounds = array<i64: 36, 20>}, {pipeline_mode = #tpu.pipeline_mode<synchronous>, transform_indices = @transform_5, window_bounds = array<i64: 1, 20>}, {pipeline_mode = #tpu.pipeline_mode<synchronous>, transform_indices = @transform_6, window_bounds = array<i64: 1, 20>}, {transform_indices = @transform_7, window_bounds = array<i64: 16, 28>}]} {
    %c0 = arith.constant 0 : index
    %c0_0 = arith.constant 0 : index
    %0 = vector.load %arg1[%c0, %c0_0] : memref<16x4xbf16, #tpu.memory_space<vmem>>, vector<16x4xbf16>
    %c0_1 = arith.constant 0 : index
    %c0_2 = arith.constant 0 : index
    %1 = vector.load %arg2[%c0_1, %c0_2] : memref<4x16xbf16, #tpu.memory_space<vmem>>, vector<4x16xbf16>
    %cst = arith.constant dense<0.000000e+00> : vector<16x16xf32>
    %2 = tpu.matmul %0, %1, %cst {dimension_numbers = #tpu.dot_dimension_numbers<[1], [0], [0], [1], [0, 0, 1, 1], [], []>} : vector<16x4xbf16>, vector<4x16xbf16>, vector<16x16xf32> -> vector<16x16xf32>
    %c0_3 = arith.constant 0 : index
    %c0_4 = arith.constant 0 : index
    %3 = vector.load %arg3[%c0_3, %c0_4] : memref<1x16xf32, #tpu.memory_space<vmem>>, vector<1x16xf32>
    %4 = vector.broadcast %3 : vector<1x16xf32> to vector<16x16xf32>
    %5 = arith.mulf %2, %4 : vector<16x16xf32>
    %c0_5 = arith.constant 0 : index
    %c0_6 = arith.constant 0 : index
    %6 = vector.load %arg4[%c0_5, %c0_6] : memref<1x16xf32, #tpu.memory_space<vmem>>, vector<1x16xf32>
    %7 = vector.broadcast %6 : vector<1x16xf32> to vector<16x16xf32>
    %8 = arith.addf %5, %7 : vector<16x16xf32>
    %cst_7 = arith.constant 0.000000e+00 : f32
    %9 = vector.broadcast %cst_7 : f32 to vector<16x16xf32>
    %10 = arith.maximumf %8, %9 : vector<16x16xf32>
    %11 = vector.extract_strided_slice %10 {offsets = [0, 0], sizes = [16, 8], strides = [1, 1]} : vector<16x16xf32> to vector<16x8xf32>
    %12 = vector.extract_strided_slice %10 {offsets = [0, 8], sizes = [16, 4], strides = [1, 1]} : vector<16x16xf32> to vector<16x4xf32>
    %13 = vector.extract_strided_slice %10 {offsets = [0, 12], sizes = [16, 4], strides = [1, 1]} : vector<16x16xf32> to vector<16x4xf32>
    %14 = arith.extf %0 : vector<16x4xbf16> to vector<16x4xf32>
    %15 = vector.extract_strided_slice %14 {offsets = [0, 0], sizes = [16, 1], strides = [1, 1]} : vector<16x4xf32> to vector<16x1xf32>
    %16 = vector.extract_strided_slice %14 {offsets = [0, 0], sizes = [16, 3], strides = [1, 1]} : vector<16x4xf32> to vector<16x3xf32>
    %17 = tpu.concatenate %15, %16 in 1 : vector<16x1xf32>, vector<16x3xf32> -> vector<16x4xf32>
    %18 = vector.extract_strided_slice %14 {offsets = [0, 1], sizes = [16, 3], strides = [1, 1]} : vector<16x4xf32> to vector<16x3xf32>
    %19 = vector.extract_strided_slice %14 {offsets = [0, 3], sizes = [16, 1], strides = [1, 1]} : vector<16x4xf32> to vector<16x1xf32>
    %20 = tpu.concatenate %18, %19 in 1 : vector<16x3xf32>, vector<16x1xf32> -> vector<16x4xf32>
    %21 = arith.maximumf %17, %20 : vector<16x4xf32>
    %22 = arith.maximumf %14, %21 : vector<16x4xf32>
    %23 = vector.extract_strided_slice %22 {offsets = [15, 0], sizes = [1, 4], strides = [1, 1]} : vector<16x4xf32> to vector<1x4xf32>
    %24 = vector.extract_strided_slice %22 {offsets = [0, 0], sizes = [15, 4], strides = [1, 1]} : vector<16x4xf32> to vector<15x4xf32>
    %25 = tpu.concatenate %23, %24 in 0 : vector<1x4xf32>, vector<15x4xf32> -> vector<16x4xf32>
    %26 = tpu.iota {dimensions = array<i32: 0>} : vector<16x4xi32>
    %c16_i32 = arith.constant 16 : i32
    %c0_i32 = arith.constant 0 : i32
    %27 = arith.cmpi eq, %c16_i32, %c0_i32 : i32
    %c1_i32 = arith.constant 1 : i32
    %28 = arith.select %27, %c1_i32, %c16_i32 : i32
    %29 = vector.broadcast %28 : i32 to vector<16x4xi32>
    %30 = arith.remsi %26, %29 : vector<16x4xi32>
    %c0_i32_8 = arith.constant 0 : i32
    %31 = vector.broadcast %c0_i32_8 : i32 to vector<16x4xi32>
    %32 = arith.cmpi ne, %30, %31 : vector<16x4xi32>
    %c0_i32_9 = arith.constant 0 : i32
    %33 = vector.broadcast %c0_i32_9 : i32 to vector<16x4xi32>
    %34 = arith.cmpi slt, %30, %33 : vector<16x4xi32>
    %c0_i32_10 = arith.constant 0 : i32
    %35 = arith.cmpi slt, %28, %c0_i32_10 : i32
    %36 = vector.broadcast %35 : i1 to vector<16x4xi1>
    %37 = vector.broadcast %36 : vector<16x4xi1> to vector<16x4xi1>
    %38 = arith.xori %34, %37 : vector<16x4xi1>
    %39 = arith.andi %38, %32 : vector<16x4xi1>
    %40 = vector.broadcast %28 : i32 to vector<16x4xi32>
    %41 = arith.addi %30, %40 : vector<16x4xi32>
    %42 = arith.select %39, %41, %30 : vector<16x4xi1>, vector<16x4xi32>
    %c-1_i32 = arith.constant -1 : i32
    %43 = vector.broadcast %c-1_i32 : i32 to vector<16x4xi32>
    %44 = arith.addi %42, %43 : vector<16x4xi32>
    %c0_i32_11 = arith.constant 0 : i32
    %45 = vector.broadcast %c0_i32_11 : i32 to vector<16x4xi32>
    %46 = arith.cmpi sge, %44, %45 : vector<16x4xi32>
    %c-1_i32_12 = arith.constant -1 : i32
    %47 = vector.broadcast %c-1_i32_12 : i32 to vector<16x4xi32>
    %48 = arith.addi %42, %47 : vector<16x4xi32>
    %c16_i32_13 = arith.constant 16 : i32
    %49 = vector.broadcast %c16_i32_13 : i32 to vector<16x4xi32>
    %50 = arith.cmpi slt, %48, %49 : vector<16x4xi32>
    %51 = arith.andi %46, %50 : vector<16x4xi1>
    %52 = arith.select %51, %25, %22 : vector<16x4xi1>, vector<16x4xf32>
    %53 = vector.extract_strided_slice %22 {offsets = [1, 0], sizes = [15, 4], strides = [1, 1]} : vector<16x4xf32> to vector<15x4xf32>
    %54 = vector.extract_strided_slice %22 {offsets = [0, 0], sizes = [1, 4], strides = [1, 1]} : vector<16x4xf32> to vector<1x4xf32>
    %55 = tpu.concatenate %53, %54 in 0 : vector<15x4xf32>, vector<1x4xf32> -> vector<16x4xf32>
    %56 = tpu.iota {dimensions = array<i32: 0>} : vector<16x4xi32>
    %c16_i32_14 = arith.constant 16 : i32
    %c0_i32_15 = arith.constant 0 : i32
    %57 = arith.cmpi eq, %c16_i32_14, %c0_i32_15 : i32
    %c1_i32_16 = arith.constant 1 : i32
    %58 = arith.select %57, %c1_i32_16, %c16_i32_14 : i32
    %59 = vector.broadcast %58 : i32 to vector<16x4xi32>
    %60 = arith.remsi %56, %59 : vector<16x4xi32>
    %c0_i32_17 = arith.constant 0 : i32
    %61 = vector.broadcast %c0_i32_17 : i32 to vector<16x4xi32>
    %62 = arith.cmpi ne, %60, %61 : vector<16x4xi32>
    %c0_i32_18 = arith.constant 0 : i32
    %63 = vector.broadcast %c0_i32_18 : i32 to vector<16x4xi32>
    %64 = arith.cmpi slt, %60, %63 : vector<16x4xi32>
    %c0_i32_19 = arith.constant 0 : i32
    %65 = arith.cmpi slt, %58, %c0_i32_19 : i32
    %66 = vector.broadcast %65 : i1 to vector<16x4xi1>
    %67 = vector.broadcast %66 : vector<16x4xi1> to vector<16x4xi1>
    %68 = arith.xori %64, %67 : vector<16x4xi1>
    %69 = arith.andi %68, %62 : vector<16x4xi1>
    %70 = vector.broadcast %58 : i32 to vector<16x4xi32>
    %71 = arith.addi %60, %70 : vector<16x4xi32>
    %72 = arith.select %69, %71, %60 : vector<16x4xi1>, vector<16x4xi32>
    %c1_i32_20 = arith.constant 1 : i32
    %73 = vector.broadcast %c1_i32_20 : i32 to vector<16x4xi32>
    %74 = arith.addi %72, %73 : vector<16x4xi32>
    %c0_i32_21 = arith.constant 0 : i32
    %75 = vector.broadcast %c0_i32_21 : i32 to vector<16x4xi32>
    %76 = arith.cmpi sge, %74, %75 : vector<16x4xi32>
    %c1_i32_22 = arith.constant 1 : i32
    %77 = vector.broadcast %c1_i32_22 : i32 to vector<16x4xi32>
    %78 = arith.addi %72, %77 : vector<16x4xi32>
    %c16_i32_23 = arith.constant 16 : i32
    %79 = vector.broadcast %c16_i32_23 : i32 to vector<16x4xi32>
    %80 = arith.cmpi slt, %78, %79 : vector<16x4xi32>
    %81 = arith.andi %76, %80 : vector<16x4xi1>
    %82 = arith.select %81, %55, %22 : vector<16x4xi1>, vector<16x4xf32>
    %83 = arith.maximumf %52, %82 : vector<16x4xf32>
    %84 = arith.maximumf %22, %83 : vector<16x4xf32>
    %85 = vector.extract_strided_slice %12 {offsets = [15, 0], sizes = [1, 4], strides = [1, 1]} : vector<16x4xf32> to vector<1x4xf32>
    %86 = vector.extract_strided_slice %12 {offsets = [0, 0], sizes = [15, 4], strides = [1, 1]} : vector<16x4xf32> to vector<15x4xf32>
    %87 = tpu.concatenate %85, %86 in 0 : vector<1x4xf32>, vector<15x4xf32> -> vector<16x4xf32>
    %88 = tpu.iota {dimensions = array<i32: 0>} : vector<16x4xi32>
    %c16_i32_24 = arith.constant 16 : i32
    %c0_i32_25 = arith.constant 0 : i32
    %89 = arith.cmpi eq, %c16_i32_24, %c0_i32_25 : i32
    %c1_i32_26 = arith.constant 1 : i32
    %90 = arith.select %89, %c1_i32_26, %c16_i32_24 : i32
    %91 = vector.broadcast %90 : i32 to vector<16x4xi32>
    %92 = arith.remsi %88, %91 : vector<16x4xi32>
    %c0_i32_27 = arith.constant 0 : i32
    %93 = vector.broadcast %c0_i32_27 : i32 to vector<16x4xi32>
    %94 = arith.cmpi ne, %92, %93 : vector<16x4xi32>
    %c0_i32_28 = arith.constant 0 : i32
    %95 = vector.broadcast %c0_i32_28 : i32 to vector<16x4xi32>
    %96 = arith.cmpi slt, %92, %95 : vector<16x4xi32>
    %c0_i32_29 = arith.constant 0 : i32
    %97 = arith.cmpi slt, %90, %c0_i32_29 : i32
    %98 = vector.broadcast %97 : i1 to vector<16x4xi1>
    %99 = vector.broadcast %98 : vector<16x4xi1> to vector<16x4xi1>
    %100 = arith.xori %96, %99 : vector<16x4xi1>
    %101 = arith.andi %100, %94 : vector<16x4xi1>
    %102 = vector.broadcast %90 : i32 to vector<16x4xi32>
    %103 = arith.addi %92, %102 : vector<16x4xi32>
    %104 = arith.select %101, %103, %92 : vector<16x4xi1>, vector<16x4xi32>
    %c-1_i32_30 = arith.constant -1 : i32
    %105 = vector.broadcast %c-1_i32_30 : i32 to vector<16x4xi32>
    %106 = arith.addi %104, %105 : vector<16x4xi32>
    %c0_i32_31 = arith.constant 0 : i32
    %107 = vector.broadcast %c0_i32_31 : i32 to vector<16x4xi32>
    %108 = arith.cmpi sge, %106, %107 : vector<16x4xi32>
    %c-1_i32_32 = arith.constant -1 : i32
    %109 = vector.broadcast %c-1_i32_32 : i32 to vector<16x4xi32>
    %110 = arith.addi %104, %109 : vector<16x4xi32>
    %c16_i32_33 = arith.constant 16 : i32
    %111 = vector.broadcast %c16_i32_33 : i32 to vector<16x4xi32>
    %112 = arith.cmpi slt, %110, %111 : vector<16x4xi32>
    %113 = arith.andi %108, %112 : vector<16x4xi1>
    %cst_34 = arith.constant 0.000000e+00 : f32
    %114 = vector.broadcast %cst_34 : f32 to vector<16x4xf32>
    %115 = arith.select %113, %87, %114 : vector<16x4xi1>, vector<16x4xf32>
    %116 = vector.extract_strided_slice %12 {offsets = [1, 0], sizes = [15, 4], strides = [1, 1]} : vector<16x4xf32> to vector<15x4xf32>
    %117 = vector.extract_strided_slice %12 {offsets = [0, 0], sizes = [1, 4], strides = [1, 1]} : vector<16x4xf32> to vector<1x4xf32>
    %118 = tpu.concatenate %116, %117 in 0 : vector<15x4xf32>, vector<1x4xf32> -> vector<16x4xf32>
    %119 = tpu.iota {dimensions = array<i32: 0>} : vector<16x4xi32>
    %c16_i32_35 = arith.constant 16 : i32
    %c0_i32_36 = arith.constant 0 : i32
    %120 = arith.cmpi eq, %c16_i32_35, %c0_i32_36 : i32
    %c1_i32_37 = arith.constant 1 : i32
    %121 = arith.select %120, %c1_i32_37, %c16_i32_35 : i32
    %122 = vector.broadcast %121 : i32 to vector<16x4xi32>
    %123 = arith.remsi %119, %122 : vector<16x4xi32>
    %c0_i32_38 = arith.constant 0 : i32
    %124 = vector.broadcast %c0_i32_38 : i32 to vector<16x4xi32>
    %125 = arith.cmpi ne, %123, %124 : vector<16x4xi32>
    %c0_i32_39 = arith.constant 0 : i32
    %126 = vector.broadcast %c0_i32_39 : i32 to vector<16x4xi32>
    %127 = arith.cmpi slt, %123, %126 : vector<16x4xi32>
    %c0_i32_40 = arith.constant 0 : i32
    %128 = arith.cmpi slt, %121, %c0_i32_40 : i32
    %129 = vector.broadcast %128 : i1 to vector<16x4xi1>
    %130 = vector.broadcast %129 : vector<16x4xi1> to vector<16x4xi1>
    %131 = arith.xori %127, %130 : vector<16x4xi1>
    %132 = arith.andi %131, %125 : vector<16x4xi1>
    %133 = vector.broadcast %121 : i32 to vector<16x4xi32>
    %134 = arith.addi %123, %133 : vector<16x4xi32>
    %135 = arith.select %132, %134, %123 : vector<16x4xi1>, vector<16x4xi32>
    %c1_i32_41 = arith.constant 1 : i32
    %136 = vector.broadcast %c1_i32_41 : i32 to vector<16x4xi32>
    %137 = arith.addi %135, %136 : vector<16x4xi32>
    %c0_i32_42 = arith.constant 0 : i32
    %138 = vector.broadcast %c0_i32_42 : i32 to vector<16x4xi32>
    %139 = arith.cmpi sge, %137, %138 : vector<16x4xi32>
    %c1_i32_43 = arith.constant 1 : i32
    %140 = vector.broadcast %c1_i32_43 : i32 to vector<16x4xi32>
    %141 = arith.addi %135, %140 : vector<16x4xi32>
    %c16_i32_44 = arith.constant 16 : i32
    %142 = vector.broadcast %c16_i32_44 : i32 to vector<16x4xi32>
    %143 = arith.cmpi slt, %141, %142 : vector<16x4xi32>
    %144 = arith.andi %139, %143 : vector<16x4xi1>
    %cst_45 = arith.constant 0.000000e+00 : f32
    %145 = vector.broadcast %cst_45 : f32 to vector<16x4xf32>
    %146 = arith.select %144, %118, %145 : vector<16x4xi1>, vector<16x4xf32>
    %147 = vector.extract_strided_slice %13 {offsets = [14, 0], sizes = [2, 4], strides = [1, 1]} : vector<16x4xf32> to vector<2x4xf32>
    %148 = vector.extract_strided_slice %13 {offsets = [0, 0], sizes = [14, 4], strides = [1, 1]} : vector<16x4xf32> to vector<14x4xf32>
    %149 = tpu.concatenate %147, %148 in 0 : vector<2x4xf32>, vector<14x4xf32> -> vector<16x4xf32>
    %150 = tpu.iota {dimensions = array<i32: 0>} : vector<16x4xi32>
    %c16_i32_46 = arith.constant 16 : i32
    %c0_i32_47 = arith.constant 0 : i32
    %151 = arith.cmpi eq, %c16_i32_46, %c0_i32_47 : i32
    %c1_i32_48 = arith.constant 1 : i32
    %152 = arith.select %151, %c1_i32_48, %c16_i32_46 : i32
    %153 = vector.broadcast %152 : i32 to vector<16x4xi32>
    %154 = arith.remsi %150, %153 : vector<16x4xi32>
    %c0_i32_49 = arith.constant 0 : i32
    %155 = vector.broadcast %c0_i32_49 : i32 to vector<16x4xi32>
    %156 = arith.cmpi ne, %154, %155 : vector<16x4xi32>
    %c0_i32_50 = arith.constant 0 : i32
    %157 = vector.broadcast %c0_i32_50 : i32 to vector<16x4xi32>
    %158 = arith.cmpi slt, %154, %157 : vector<16x4xi32>
    %c0_i32_51 = arith.constant 0 : i32
    %159 = arith.cmpi slt, %152, %c0_i32_51 : i32
    %160 = vector.broadcast %159 : i1 to vector<16x4xi1>
    %161 = vector.broadcast %160 : vector<16x4xi1> to vector<16x4xi1>
    %162 = arith.xori %158, %161 : vector<16x4xi1>
    %163 = arith.andi %162, %156 : vector<16x4xi1>
    %164 = vector.broadcast %152 : i32 to vector<16x4xi32>
    %165 = arith.addi %154, %164 : vector<16x4xi32>
    %166 = arith.select %163, %165, %154 : vector<16x4xi1>, vector<16x4xi32>
    %c-2_i32 = arith.constant -2 : i32
    %167 = vector.broadcast %c-2_i32 : i32 to vector<16x4xi32>
    %168 = arith.addi %166, %167 : vector<16x4xi32>
    %c0_i32_52 = arith.constant 0 : i32
    %169 = vector.broadcast %c0_i32_52 : i32 to vector<16x4xi32>
    %170 = arith.cmpi sge, %168, %169 : vector<16x4xi32>
    %c-2_i32_53 = arith.constant -2 : i32
    %171 = vector.broadcast %c-2_i32_53 : i32 to vector<16x4xi32>
    %172 = arith.addi %166, %171 : vector<16x4xi32>
    %c16_i32_54 = arith.constant 16 : i32
    %173 = vector.broadcast %c16_i32_54 : i32 to vector<16x4xi32>
    %174 = arith.cmpi slt, %172, %173 : vector<16x4xi32>
    %175 = arith.andi %170, %174 : vector<16x4xi1>
    %cst_55 = arith.constant 0.000000e+00 : f32
    %176 = vector.broadcast %cst_55 : f32 to vector<16x4xf32>
    %177 = arith.select %175, %149, %176 : vector<16x4xi1>, vector<16x4xf32>
    %178 = vector.extract_strided_slice %13 {offsets = [15, 0], sizes = [1, 4], strides = [1, 1]} : vector<16x4xf32> to vector<1x4xf32>
    %179 = vector.extract_strided_slice %13 {offsets = [0, 0], sizes = [15, 4], strides = [1, 1]} : vector<16x4xf32> to vector<15x4xf32>
    %180 = tpu.concatenate %178, %179 in 0 : vector<1x4xf32>, vector<15x4xf32> -> vector<16x4xf32>
    %181 = tpu.iota {dimensions = array<i32: 0>} : vector<16x4xi32>
    %c16_i32_56 = arith.constant 16 : i32
    %c0_i32_57 = arith.constant 0 : i32
    %182 = arith.cmpi eq, %c16_i32_56, %c0_i32_57 : i32
    %c1_i32_58 = arith.constant 1 : i32
    %183 = arith.select %182, %c1_i32_58, %c16_i32_56 : i32
    %184 = vector.broadcast %183 : i32 to vector<16x4xi32>
    %185 = arith.remsi %181, %184 : vector<16x4xi32>
    %c0_i32_59 = arith.constant 0 : i32
    %186 = vector.broadcast %c0_i32_59 : i32 to vector<16x4xi32>
    %187 = arith.cmpi ne, %185, %186 : vector<16x4xi32>
    %c0_i32_60 = arith.constant 0 : i32
    %188 = vector.broadcast %c0_i32_60 : i32 to vector<16x4xi32>
    %189 = arith.cmpi slt, %185, %188 : vector<16x4xi32>
    %c0_i32_61 = arith.constant 0 : i32
    %190 = arith.cmpi slt, %183, %c0_i32_61 : i32
    %191 = vector.broadcast %190 : i1 to vector<16x4xi1>
    %192 = vector.broadcast %191 : vector<16x4xi1> to vector<16x4xi1>
    %193 = arith.xori %189, %192 : vector<16x4xi1>
    %194 = arith.andi %193, %187 : vector<16x4xi1>
    %195 = vector.broadcast %183 : i32 to vector<16x4xi32>
    %196 = arith.addi %185, %195 : vector<16x4xi32>
    %197 = arith.select %194, %196, %185 : vector<16x4xi1>, vector<16x4xi32>
    %c-1_i32_62 = arith.constant -1 : i32
    %198 = vector.broadcast %c-1_i32_62 : i32 to vector<16x4xi32>
    %199 = arith.addi %197, %198 : vector<16x4xi32>
    %c0_i32_63 = arith.constant 0 : i32
    %200 = vector.broadcast %c0_i32_63 : i32 to vector<16x4xi32>
    %201 = arith.cmpi sge, %199, %200 : vector<16x4xi32>
    %c-1_i32_64 = arith.constant -1 : i32
    %202 = vector.broadcast %c-1_i32_64 : i32 to vector<16x4xi32>
    %203 = arith.addi %197, %202 : vector<16x4xi32>
    %c16_i32_65 = arith.constant 16 : i32
    %204 = vector.broadcast %c16_i32_65 : i32 to vector<16x4xi32>
    %205 = arith.cmpi slt, %203, %204 : vector<16x4xi32>
    %206 = arith.andi %201, %205 : vector<16x4xi1>
    %cst_66 = arith.constant 0.000000e+00 : f32
    %207 = vector.broadcast %cst_66 : f32 to vector<16x4xf32>
    %208 = arith.select %206, %180, %207 : vector<16x4xi1>, vector<16x4xf32>
    %209 = vector.extract_strided_slice %13 {offsets = [1, 0], sizes = [15, 4], strides = [1, 1]} : vector<16x4xf32> to vector<15x4xf32>
    %210 = vector.extract_strided_slice %13 {offsets = [0, 0], sizes = [1, 4], strides = [1, 1]} : vector<16x4xf32> to vector<1x4xf32>
    %211 = tpu.concatenate %209, %210 in 0 : vector<15x4xf32>, vector<1x4xf32> -> vector<16x4xf32>
    %212 = tpu.iota {dimensions = array<i32: 0>} : vector<16x4xi32>
    %c16_i32_67 = arith.constant 16 : i32
    %c0_i32_68 = arith.constant 0 : i32
    %213 = arith.cmpi eq, %c16_i32_67, %c0_i32_68 : i32
    %c1_i32_69 = arith.constant 1 : i32
    %214 = arith.select %213, %c1_i32_69, %c16_i32_67 : i32
    %215 = vector.broadcast %214 : i32 to vector<16x4xi32>
    %216 = arith.remsi %212, %215 : vector<16x4xi32>
    %c0_i32_70 = arith.constant 0 : i32
    %217 = vector.broadcast %c0_i32_70 : i32 to vector<16x4xi32>
    %218 = arith.cmpi ne, %216, %217 : vector<16x4xi32>
    %c0_i32_71 = arith.constant 0 : i32
    %219 = vector.broadcast %c0_i32_71 : i32 to vector<16x4xi32>
    %220 = arith.cmpi slt, %216, %219 : vector<16x4xi32>
    %c0_i32_72 = arith.constant 0 : i32
    %221 = arith.cmpi slt, %214, %c0_i32_72 : i32
    %222 = vector.broadcast %221 : i1 to vector<16x4xi1>
    %223 = vector.broadcast %222 : vector<16x4xi1> to vector<16x4xi1>
    %224 = arith.xori %220, %223 : vector<16x4xi1>
    %225 = arith.andi %224, %218 : vector<16x4xi1>
    %226 = vector.broadcast %214 : i32 to vector<16x4xi32>
    %227 = arith.addi %216, %226 : vector<16x4xi32>
    %228 = arith.select %225, %227, %216 : vector<16x4xi1>, vector<16x4xi32>
    %c1_i32_73 = arith.constant 1 : i32
    %229 = vector.broadcast %c1_i32_73 : i32 to vector<16x4xi32>
    %230 = arith.addi %228, %229 : vector<16x4xi32>
    %c0_i32_74 = arith.constant 0 : i32
    %231 = vector.broadcast %c0_i32_74 : i32 to vector<16x4xi32>
    %232 = arith.cmpi sge, %230, %231 : vector<16x4xi32>
    %c1_i32_75 = arith.constant 1 : i32
    %233 = vector.broadcast %c1_i32_75 : i32 to vector<16x4xi32>
    %234 = arith.addi %228, %233 : vector<16x4xi32>
    %c16_i32_76 = arith.constant 16 : i32
    %235 = vector.broadcast %c16_i32_76 : i32 to vector<16x4xi32>
    %236 = arith.cmpi slt, %234, %235 : vector<16x4xi32>
    %237 = arith.andi %232, %236 : vector<16x4xi1>
    %cst_77 = arith.constant 0.000000e+00 : f32
    %238 = vector.broadcast %cst_77 : f32 to vector<16x4xf32>
    %239 = arith.select %237, %211, %238 : vector<16x4xi1>, vector<16x4xf32>
    %240 = vector.extract_strided_slice %13 {offsets = [2, 0], sizes = [14, 4], strides = [1, 1]} : vector<16x4xf32> to vector<14x4xf32>
    %241 = vector.extract_strided_slice %13 {offsets = [0, 0], sizes = [2, 4], strides = [1, 1]} : vector<16x4xf32> to vector<2x4xf32>
    %242 = tpu.concatenate %240, %241 in 0 : vector<14x4xf32>, vector<2x4xf32> -> vector<16x4xf32>
    %243 = tpu.iota {dimensions = array<i32: 0>} : vector<16x4xi32>
    %c16_i32_78 = arith.constant 16 : i32
    %c0_i32_79 = arith.constant 0 : i32
    %244 = arith.cmpi eq, %c16_i32_78, %c0_i32_79 : i32
    %c1_i32_80 = arith.constant 1 : i32
    %245 = arith.select %244, %c1_i32_80, %c16_i32_78 : i32
    %246 = vector.broadcast %245 : i32 to vector<16x4xi32>
    %247 = arith.remsi %243, %246 : vector<16x4xi32>
    %c0_i32_81 = arith.constant 0 : i32
    %248 = vector.broadcast %c0_i32_81 : i32 to vector<16x4xi32>
    %249 = arith.cmpi ne, %247, %248 : vector<16x4xi32>
    %c0_i32_82 = arith.constant 0 : i32
    %250 = vector.broadcast %c0_i32_82 : i32 to vector<16x4xi32>
    %251 = arith.cmpi slt, %247, %250 : vector<16x4xi32>
    %c0_i32_83 = arith.constant 0 : i32
    %252 = arith.cmpi slt, %245, %c0_i32_83 : i32
    %253 = vector.broadcast %252 : i1 to vector<16x4xi1>
    %254 = vector.broadcast %253 : vector<16x4xi1> to vector<16x4xi1>
    %255 = arith.xori %251, %254 : vector<16x4xi1>
    %256 = arith.andi %255, %249 : vector<16x4xi1>
    %257 = vector.broadcast %245 : i32 to vector<16x4xi32>
    %258 = arith.addi %247, %257 : vector<16x4xi32>
    %259 = arith.select %256, %258, %247 : vector<16x4xi1>, vector<16x4xi32>
    %c2_i32 = arith.constant 2 : i32
    %260 = vector.broadcast %c2_i32 : i32 to vector<16x4xi32>
    %261 = arith.addi %259, %260 : vector<16x4xi32>
    %c0_i32_84 = arith.constant 0 : i32
    %262 = vector.broadcast %c0_i32_84 : i32 to vector<16x4xi32>
    %263 = arith.cmpi sge, %261, %262 : vector<16x4xi32>
    %c2_i32_85 = arith.constant 2 : i32
    %264 = vector.broadcast %c2_i32_85 : i32 to vector<16x4xi32>
    %265 = arith.addi %259, %264 : vector<16x4xi32>
    %c16_i32_86 = arith.constant 16 : i32
    %266 = vector.broadcast %c16_i32_86 : i32 to vector<16x4xi32>
    %267 = arith.cmpi slt, %265, %266 : vector<16x4xi32>
    %268 = arith.andi %263, %267 : vector<16x4xi1>
    %cst_87 = arith.constant 0.000000e+00 : f32
    %269 = vector.broadcast %cst_87 : f32 to vector<16x4xf32>
    %270 = arith.select %268, %242, %269 : vector<16x4xi1>, vector<16x4xf32>
    %271 = tpu.concatenate %115, %12, %146, %177, %208, %13, %239, %270, %84 in 1 : vector<16x4xf32>, vector<16x4xf32>, vector<16x4xf32>, vector<16x4xf32>, vector<16x4xf32>, vector<16x4xf32>, vector<16x4xf32>, vector<16x4xf32>, vector<16x4xf32> -> vector<16x36xf32>
    %272 = arith.truncf %271 : vector<16x36xf32> to vector<16x36xbf16>
    %c0_88 = arith.constant 0 : index
    %c0_89 = arith.constant 0 : index
    %273 = vector.load %arg5[%c0_88, %c0_89] : memref<36x20xbf16, #tpu.memory_space<vmem>>, vector<36x20xbf16>
    %cst_90 = arith.constant dense<0.000000e+00> : vector<16x20xf32>
    %274 = tpu.matmul %272, %273, %cst_90 {dimension_numbers = #tpu.dot_dimension_numbers<[1], [0], [0], [1], [0, 0, 1, 1], [], []>} : vector<16x36xbf16>, vector<36x20xbf16>, vector<16x20xf32> -> vector<16x20xf32>
    %c0_91 = arith.constant 0 : index
    %c0_92 = arith.constant 0 : index
    %275 = vector.load %arg6[%c0_91, %c0_92] : memref<1x20xf32, #tpu.memory_space<vmem>>, vector<1x20xf32>
    %276 = vector.broadcast %275 : vector<1x20xf32> to vector<16x20xf32>
    %277 = arith.mulf %274, %276 : vector<16x20xf32>
    %c0_93 = arith.constant 0 : index
    %c0_94 = arith.constant 0 : index
    %278 = vector.load %arg7[%c0_93, %c0_94] : memref<1x20xf32, #tpu.memory_space<vmem>>, vector<1x20xf32>
    %279 = vector.broadcast %278 : vector<1x20xf32> to vector<16x20xf32>
    %280 = arith.addf %277, %279 : vector<16x20xf32>
    %cst_95 = arith.constant 0.000000e+00 : f32
    %281 = vector.broadcast %cst_95 : f32 to vector<16x20xf32>
    %282 = arith.maximumf %280, %281 : vector<16x20xf32>
    %c0_96 = arith.constant 0 : index
    %c0_97 = arith.constant 0 : index
    %283 = vector.load %arg8[%c0_96, %c0_97] : memref<16x28xf32, #tpu.memory_space<vmem>>, vector<16x8xf32>
    tpu.vector_store %arg8[%c0_96, %c0_97], %11 {strides = array<i32>} : memref<16x28xf32, #tpu.memory_space<vmem>>, vector<16x8xf32>,
    %c0_98 = arith.constant 0 : index
    %c8 = arith.constant 8 : index
    %284 = vector.load %arg8[%c0_98, %c8] : memref<16x28xf32, #tpu.memory_space<vmem>>, vector<16x20xf32>
    tpu.vector_store %arg8[%c0_98, %c8], %282 {strides = array<i32>} : memref<16x28xf32, #tpu.memory_space<vmem>>, vector<16x20xf32>,
    return
  }
  func.func @transform_0(%arg0: i32) -> (i32, i32) {
    %c0_i32 = arith.constant 0 : i32
    %c0_i32_0 = arith.constant 0 : i32
    return %arg0, %c0_i32 : i32, i32
  }
  func.func @transform_1(%arg0: i32) -> (i32, i32) {
    %c0_i32 = arith.constant 0 : i32
    %c0_i32_0 = arith.constant 0 : i32
    %c0_i32_1 = arith.constant 0 : i32
    return %c0_i32, %c0_i32_0 : i32, i32
  }
  func.func @transform_2(%arg0: i32) -> (i32, i32) {
    %c0_i32 = arith.constant 0 : i32
    %c0_i32_0 = arith.constant 0 : i32
    %c0_i32_1 = arith.constant 0 : i32
    return %c0_i32, %c0_i32_0 : i32, i32
  }
  func.func @transform_3(%arg0: i32) -> (i32, i32) {
    %c0_i32 = arith.constant 0 : i32
    %c0_i32_0 = arith.constant 0 : i32
    %c0_i32_1 = arith.constant 0 : i32
    return %c0_i32, %c0_i32_0 : i32, i32
  }
  func.func @transform_4(%arg0: i32) -> (i32, i32) {
    %c0_i32 = arith.constant 0 : i32
    %c0_i32_0 = arith.constant 0 : i32
    %c0_i32_1 = arith.constant 0 : i32
    return %c0_i32, %c0_i32_0 : i32, i32
  }
  func.func @transform_5(%arg0: i32) -> (i32, i32) {
    %c0_i32 = arith.constant 0 : i32
    %c0_i32_0 = arith.constant 0 : i32
    %c0_i32_1 = arith.constant 0 : i32
    return %c0_i32, %c0_i32_0 : i32, i32
  }
  func.func @transform_6(%arg0: i32) -> (i32, i32) {
    %c0_i32 = arith.constant 0 : i32
    %c0_i32_0 = arith.constant 0 : i32
    %c0_i32_1 = arith.constant 0 : i32
    return %c0_i32, %c0_i32_0 : i32, i32
  }
  func.func @transform_7(%arg0: i32) -> (i32, i32) {
    %c0_i32 = arith.constant 0 : i32
    %c0_i32_0 = arith.constant 0 : i32
    return %arg0, %c0_i32 : i32, i32
  }
}

</mosaic_0001>

<bundles_post_ra>
// kernel: tpu_custom_call.1
= control target key start
LH: loop header
LB: loop body
LE: loop exit
PB: predicated region body
PF: predicated region fallthrough
CT: control target
= control target key end

     0   :  { %v12_v0 = vlaneseq  ;;  %vm17_vm0 = vcmask 31744   ;;  %s46_s0 = inlined_call_operand.vmem [shape: f32[16,4], index: 0, kind: input, shape index: {}]   ;;  %s47_s1 = inlined_call_operand.vmem [shape: f32[16,4], index: 1, kind: output, shape index: {}]  }
   0x1   :  { %v8_v1 = vld [vmem:[%s46_s0] sm:$0xff]  ;;  %v9_v2 = vld [vmem:[%s46_s0 + $0x8] sm:$0xff] }
   0x2   :  { %v10_v3 = vrot.slane %v8_v1, 5  ;;  %v11_v4 = vrot.slane %v9_v2, 5  ;;  %v13_v5 = vshrl.u32 %v12_v0, 7 }
   0x4   :  { %vm14_vm1 = vcmp.lt.s32.totalorder %v13_v5, 3 }
   0x5   :  { %v16_v6 = vsel %vm14_vm1, %v11_v4, %v10_v3  ;;  %v15_v7 = vsel %vm14_vm1, %v10_v3, %v11_v4 }
   0x6   :  { %18 = vst.msk [vmem:[%s47_s1] sm:$0xff] %vm17_vm0, %v16_v6  ;;  %19 = vst.msk [vmem:[%s47_s1 + $0x8] sm:$0xff] %vm17_vm0, %v15_v7 }

// kernel: tpu_custom_call.1
= control target key start
LH: loop header
LB: loop body
LE: loop exit
PB: predicated region body
PF: predicated region fallthrough
CT: control target
= control target key end

     0   :  { %12 = vsyncpa [#allocation3], 0  ;;  %s1212_s0 = inlined_call_operand.vmem [shape: bf16[32,4], index: 0, kind: input, shape index: {}]   ;;  %s1213_s1 = inlined_call_operand.vmem [shape: bf16[4,16], index: 1, kind: input, shape index: {}]   ;;  %s1214_s2 = inlined_call_operand.vmem [shape: f32[1,16], index: 2, kind: input, shape index: {}]   ;;  %s1215_s3 = inlined_call_operand.vmem [shape: f32[1,16], index: 3, kind: input, shape index: {}]   ;;  %s1216_s4 = inlined_call_operand.vmem [shape: bf16[36,20], index: 4, kind: input, shape index: {}]   ;;  %s1217_s5 = inlined_call_operand.vmem [shape: f32[1,20], index: 5, kind: input, shape index: {}]   ;;  %s1218_s6 = inlined_call_operand.vmem [shape: f32[1,20], index: 6, kind: input, shape index: {}]   ;;  %s1219_s7 = inlined_call_operand.hbm [shape: f32[32,28], index: 7, kind: output, shape index: {}]  }
   0x1   :  { %14 = vsyncpa [#allocation3 + $0x1], 0  ;;  %s1020_s24 = smov 0   ;;  %s1022_s25 = smov 0  }
   0x2   :  { %s1024_s26 = smov 0   ;;  %s1026_s27 = smov 0  }
   0x3 LB: > { %s1041_s28 = sadd.s32 4294967295, %s965_s27   ;;  %s759_s29 = sadd.s32 4294967294, %s965_s27   ;;  %s965_s27 = sphi %s1026_s27, %s1225_s27   ;;  %s961_s26 = sphi %s1024_s26, %s1224_s26   ;;  %s957_s25 = sphi %s1022_s25, %s1223_s25   ;;  %s953_s24 = sphi %s1020_s24, %s1222_s24  }
   0x4   : > { %s1045_s30 = sadd.s32 1, %s965_s27   ;;  %s179_s8 = sadd.s32 1, %s961_s26 }
   0x5   : > { %s176_s9 = ssub.s32 %s965_s27, %s1045_s30  ;;  %p189_p0 = scmp.ne.s32.totalorder %s961_s26, %s957_s25 }
   0x6   : > { %p177_p1 = scmp.eq.s32.totalorder %s176_s9, 0  ;;  %p190_p2 = scmp.eq.s32.totalorder %s1041_s28, 1 }
   0x7   : > { %p195_p3 = scmp.ne.s32.totalorder %s957_s25, %s953_s24  ;;  %p196_p4 = scmp.eq.s32.totalorder %s759_s29, 1 }
   0x8   : > { %s1056_s10 = scalar_select %p177_p1, %s961_s26, %s179_s8  }
   0x9   : > { %p1058_p5 = por %p190_p2, %p189_p0  ;;  %p1062_p6 = por %p196_p4, %p195_p3 }
   0xa   : > { %p762_p7 = scmp.ge.s32.totalorder %s965_s27, 1  ;;  %p241_p8 = scmp.lt.s32.totalorder %s965_s27, 3 }
   0xc   : > { %p242_p9 = pnand %p762_p7, %p241_p8 }
   0xd   : > { %s764_s15 = sshll.u32 (!%p242_p9), %s1041_s28, 1  ;;  %s969_s20 = smov (!%p242_p9), 1  }
   0xe   : > { %245 = sbr.rel (%p242_p9) target bundleno = 694 (0x2b6), region = 48  ;;  %p274_p10 = scmp.lt.s32.totalorder (!%p242_p9), %s764_s15, 3 }
   0xf   : > { %s970_s21 = smov (!%p242_p9), 127   ;;  %s270_s29 = sand.u32 (!%p242_p9), 1, %s957_s25  }
  0x10   : > { %s763_s13 = sshll.u32 (!%p242_p9), %s270_s29, 4  ;;  %s972_s22 = smov (!%p242_p9), 4  }
  0x11   : > { %s973_s23 = smov (!%p242_p9), 120   ;;  %s974_s8 = smov (!%p242_p9), 12  }
  0x12   : > { %s975_s9 = smov (!%p242_p9), 8   ;;  %s977_s14 = smov (!%p242_p9), 16  }
  0x13   : > { %v283_v0 = vld [vmem:[%s1213_s1] sm:$0x3]  ;;  %vm293_vm0 = vcmask 1041408   ;;  %v967_v1 = vmov 0.0   ;;  %vm968_vm1 = vmmov 0   ;;  %s1227_s15 = smov (!%p274_p10, %s764_s15), 3  ;;  %v394_v9 = vlaneseq }
  0x14   : > { %788 = vmatprep.subr.bf16.mxu0 %v967_v1  ;;  %v295_v2 = vsel %vm293_vm0, %v283_v0, 0  ;;  %790 = vmatprep.mubr.msk.bf16.mxu0 %vm968_vm1, %v967_v1  ;;  %s765_s16 = sshll.u32 %s1227_s15, 2  ;;  %vm289_vm2 = vcmask 31744   ;;  %vm368_vm3 = vcmask 7168   ;;  %vm377_vm4 = vcmask 23552   ;;  %v902_v57 = vld [vmem:[%s1216_s4 + $0x8] sm:$0xff]  }
  0x15   : > { %789 = vmatpush3.bf16.msra.mxu0 %v295_v2  ;;  %794 = vmatprep.subr.bf16.mxu1 %v967_v1  ;;  %s277_s19 = scalar_lea.vmem %s1212_s0, %s765_s16  ;;  %v395_v14 = vshrl.u32 %v394_v9, 7  ;;  %v768_v22 = vld [vmem:[%s1214_s2] ss:$0 sm:$0xff]  ;;  %vm388_vm5 = vcmask 1040384   ;;  %vm560_vm6 = vcmask 64512   ;;  %vm431_vm7 = vcmask 1046528  }
  0x16   : > { %800 = vmatprep.mubr.msk.bf16.mxu1 %vm968_vm1, %v967_v1  ;;  %v281_v3 = vld [vmem:[%s277_s19] sm:$0xff]   ;;  %v901_v43 = vld [vmem:[%s1216_s4 + $0x10] ss:$0 sps:$4 sm:$0x33]   ;;  %s1104_s16 = scalar_lea.vmem [#allocation2], %s763_s13  ;;  %vm490_vm11 = vcmask 1045504  }
  0x17   : > { %v358_v4 = vunpack.c.l.bf16 %v281_v3  ;;  %v359_v5 = vunpack.c.h.bf16 %v281_v3  ;;  %v396_v21 = vadd.s32 8, %v395_v14  ;;  %v401_v25 = vand.u32 15, %v395_v14  ;;  %v769_v27 = vld [vmem:[%s1215_s3] ss:$0 sm:$0xff]  ;;  %s971_s19 = smov 124   ;;  %s976_s13 = smov 32  }
  0x18   : > { %791 = vmatmul.mubr.msk.bf16.vlgmr.msra.gmra.mxu0 %vm289_vm2, %v281_v3  ;;  %v607_v46 = vsel %vm293_vm0, %v901_v43, 0  ;;  %vm563_vm13 = vcmask 97280   ;;  %vm566_vm14 = vcmask 130048   ;;  %vm569_vm15 = vcmask 162816  }
  0x19   : > { %v855_v6 = vpack.i.bf16 %v359_v5, %v358_v4  ;;  %v408_v28 = vand.u32 15, %v396_v21  ;;  %v421_v34 = vadd.s32 4294967295, %v401_v25  ;;  %v480_v36 = vadd.s32 4294967294, %v401_v25  ;;  %795 = vmatpush3.bf16.msra.mxu1 %v607_v46 }
  0x1a   : > { %796 = vmatprep.subr.bf16.mxu1 %v967_v1  ;;  %vm575_vm1 = vcmask 228352  }
  0x1b   : > { %856 = vrot.lane.b32.xlu0 %v855_v6, %s969_s20  ;;  %v440_v37 = vadd.s32 1, %v408_v28  ;;  %vm423_vm8 = vcmp.ge.s32.totalorder %v421_v34, 0  ;;  %vm482_vm10 = vcmp.ge.s32.totalorder %v480_v36, 0  ;;  %v499_v61 = vadd.s32 2, %v408_v28  ;;  %s781_s20 = sshll.u32 %s1041_s28, 8  ;;  %s978_s28 = smov [#allocation2]  }
  0x1c   : > { %s909_s15 = sshll.u32 %s978_s28, 4  ;;  %s910_s15 = int_to_ptr.vmem [resolvable:$false] %s909_s15 }
  0x1d   : > { %vm444_vm9 = vcmp.lt.s32.totalorder %v440_v37, 16  ;;  %797 = vmatpush3.bf16.msra.mxu1 %v902_v57  ;;  %vm503_vm12 = vcmp.lt.s32.totalorder %v499_v61, 16  ;;  %v775_v61 = vld [vmem:[%s1218_s6] ss:$0 sm:$0xff]  ;;  %s911_s17 = scalar_lea.vmem %s910_s15, 512 }
  0x1e   : > { %798 = vmatprep.subr.bf16.mxu1 %v967_v1 }
  0x1f   : > { %861 = vrot.lane.b32.xlu0 %v855_v6, %s970_s21  ;;  %s697_s21 = sshll.u32 %s1104_s16, 4  ;;  %s1166_s21 = int_to_ptr.vmem [resolvable:$true] %s697_s21 }
  0x20   : > { %p912_p0 = scmp.lt.s32.totalorder %s1166_s21, %s910_s15 }
  0x8d   : > { %v857_v7 = vpop.permute.xlu0 %856 }
  0x8e   : > { %v859_v10 = vunpack.i.h.bf16 %v857_v7  ;;  %v858_v11 = vunpack.i.l.bf16 %v857_v7  ;;  %v903_v7 = vld [vmem:[%s1216_s4] sm:$0xff]  }
  0x8f   : > { %799 = vmatpush3.bf16.msra.mxu1 %v903_v7 }
  0x90   : > { %v370_v15 = vsel %vm368_vm3, %v359_v5, %v859_v10  ;;  %v369_v16 = vsel %vm368_vm3, %v358_v4, %v858_v11  ;;  %vm602_vm3 = vcmask 293888  }
  0x91   : > { %v862_v8 = vpop.permute.xlu0 %861 }
  0x92   : > { %v864_v12 = vunpack.i.h.bf16 %v862_v8  ;;  %v863_v13 = vunpack.i.l.bf16 %v862_v8 }
  0x94   : > { %v379_v17 = vsel %vm377_vm4, %v864_v12, %v359_v5  ;;  %v378_v18 = vsel %vm377_vm4, %v863_v13, %v358_v4  ;;  %vm680_vm4 = vcmask 228416  }
  0x95   : > { %v380_v19 = vmax.f32 %v369_v16, %v378_v18  ;;  %v381_v20 = vmax.f32 %v370_v15, %v379_v17 }
  0x97   : > { %v1085_v23 = vmax.f32 %v358_v4, %v380_v19  ;;  %v1087_v24 = vmax.f32 %v359_v5, %v381_v20 }
  0x99   : > { %v385_v32 = vrot.slane %v1087_v24, 7  ;;  %v389_v33 = vrot.slane %v1085_v23, 7  ;;  %v432_v40 = vrot.slane %v1085_v23, 1  ;;  %v433_v41 = vrot.slane %v1087_v24, 1 }
  0x9b   : > { %v393_v45 = vsel %vm388_vm5, %v385_v32, %v389_v33  ;;  %v438_v48 = vsel %vm431_vm7, %v433_v41, %v432_v40  ;;  %v434_v52 = vsel %vm431_vm7, %v432_v40, %v433_v41  ;;  %v390_v60 = vsel %vm388_vm5, %v389_v33, %v385_v32 }
  0x9c   : > { %v429_v49 = vsel %vm423_vm8, %v393_v45, %v1085_v23  ;;  %v448_v58 = vsel %vm444_vm9, %v438_v48, %v1087_v24 }
  0x9d   : > { %v449_v6 = vmax.f32 %v429_v49, %v434_v52  ;;  %v450_v9 = vmax.f32 %v390_v60, %v448_v58 }
  0x9f   : > { %v451_v16 = vmax.f32 %v1085_v23, %v449_v6  ;;  %v452_v17 = vmax.f32 %v1087_v24, %v450_v9 }
  0xa1   : > { %v895_v19 = vpack.i.bf16 %v452_v17, %v451_v16 }
  0xd8   : > { %v331_v26 = vpop.f32.mrf.mxu0 }
  0xd9   : > { %v345_v29 = vmul.f32 %v768_v22, %v331_v26 }
  0xda   : > { %v792_v30 = vpop.f32.mrf.mxu0 }
  0xdb   : > { %v354_v31 = vadd.f32 %v769_v27, %v345_v29 }
  0xdc   : > { %v334_v35 = vpop.f32.mrf.mxu0 }
  0xdd   : > { %v1096_v38 = vmax.f32 %v354_v31, 0.0  ;;  %v346_v39 = vmul.f32 %v768_v22, %v334_v35 }
  0xde   : > { %v793_v42 = vpop.f32.mrf.mxu0 }
  0xdf   : > { %v355_v44 = vadd.f32 %v769_v27, %v346_v39  ;;  %670 = vst.msk [vmem:[%s1104_s16] sm:$0xff] %vm560_vm6, %v1096_v38  ;;  %v457_v50 = vrot.slane %v1096_v38, 7  ;;  %v475_v51 = vrot.slane %v1096_v38, 6  ;;  %v464_v59 = vrot.slane %v1096_v38, 1 }
  0xe0   : > { %v491_v10 = vrot.slane %v1096_v38, 2 }
  0xe1   : > { %v357_v47 = vmax.f32 %v355_v44, 0.0 }
  0xe3   : > { %v865_v53 = vpack.i.bf16 %v357_v47, %v1096_v38  ;;  %v454_v54 = vrot.slane %v357_v47, 7  ;;  %v473_v55 = vrot.slane %v357_v47, 6  ;;  %v465_v56 = vrot.slane %v357_v47, 1  ;;  %671 = vst.msk [vmem:[%s1104_s16 + $0x8] sm:$0xff] %vm560_vm6, %v357_v47 }
  0xe4   : > { %v492_v2 = vrot.slane %v357_v47, 2 }
  0xe5   : > { %866 = vrot.lane.b32.xlu1 %v865_v53, %s971_s19  ;;  %v458_v62 = vsel %vm388_vm5, %v457_v50, %v454_v54  ;;  %v461_v63 = vsel %vm388_vm5, %v454_v54, %v457_v50  ;;  %v479_v0 = vsel %vm293_vm0, %v473_v55, %v475_v51  ;;  %v470_v5 = vsel %vm431_vm7, %v465_v56, %v464_v59 }
  0xe6   : > { %v462_v3 = vsel %vm423_vm8, %v461_v63, 0.0  ;;  %v488_v4 = vsel %vm482_vm10, %v479_v0, 0.0  ;;  %v466_v11 = vsel %vm431_vm7, %v464_v59, %v465_v56  ;;  %v472_v12 = vsel %vm444_vm9, %v470_v5, 0.0  ;;  %v774_v59 = vld [vmem:[%s1217_s5] ss:$0 sm:$0xff] }
  0xe7   : > { %v880_v8 = vpack.i.bf16 %v458_v62, %v462_v3  ;;  %v476_v13 = vsel %vm293_vm0, %v475_v51, %v473_v55  ;;  %v497_v14 = vsel %vm490_vm11, %v492_v2, %v491_v10  ;;  %v885_v15 = vpack.i.bf16 %v472_v12, %v466_v11 }
  0xe8   : > { %v493_v1 = vsel %vm490_vm11, %v491_v10, %v492_v2  ;;  %v507_v18 = vsel %vm503_vm12, %v497_v14, 0.0  ;;  %vm572_vm0 = vcmask 195584  }
  0xe9   : > { %881 = vrot.lane.b32.xlu0 %v880_v8, %s972_s22  ;;  %871 = vrot.lane.b32.xlu1 %v880_v8, %s973_s23  ;;  %v890_v20 = vpack.i.bf16 %v507_v18, %v493_v1 }
  0xed   : > { %886 = vrot.lane.b32.xlu0 %v885_v15, %s974_s8  ;;  %876 = vrot.lane.b32.xlu1 %v865_v53, %s975_s9  ;;  %s1164_s8 = scalar_lea.hbm %s1219_s7, %s781_s20 }
  0xf1   : > { %896 = vrot.lane.b32.xlu0 %v895_v19, %s976_s13  ;;  %891 = vrot.lane.b32.xlu1 %v890_v20, %s977_s14  ;;  %s1171_s13 = scalar_lea.sflag [#allocation3], %s270_s29  ;;  %s905_s14 = scalar_lea.vmem %s1166_s21, 256 }
  0xf2   : > { %p906_p11 = scmp.ne.s32.totalorder %s1166_s21, %s905_s14  ;;  %p913_p1 = scmp.lt.s32.totalorder %s911_s17, %s905_s14 }
  0xf4   : > { %p907_p12 = pnand %p906_p11, %p1058_p5  ;;  %p914_p2 = por %p913_p1, %p912_p0 }
  0xf6   : > { %p908_p13 = pneg %p907_p12 }
  0xf8   : > { %p915_p3 = pnand %p914_p2, %p908_p13 }
 0x157   : > { %v867_v21 = vpop.permute.xlu1 %866 }
 0x158   : > { %v869_v23 = vunpack.i.h.bf16 %v867_v21  ;;  %v868_v26 = vunpack.i.l.bf16 %v867_v21 }
 0x15b   : > { %v882_v22 = vpop.permute.xlu0 %881  ;;  %v872_v25 = vpop.permute.xlu1 %871 }
 0x15c   : > { %v874_v24 = vunpack.i.h.bf16 %v872_v25  ;;  %v873_v27 = vunpack.i.l.bf16 %v872_v25  ;;  %v884_v34 = vunpack.i.h.bf16 %v882_v22  ;;  %v883_v35 = vunpack.i.l.bf16 %v882_v22 }
 0x15e   : > { %v559_v28 = vsel %vm289_vm2, %v874_v24, %v869_v23  ;;  %v558_v29 = vsel %vm289_vm2, %v873_v27, %v868_v26  ;;  %vm578_vm2 = vcmask 261120  }
 0x15f   : > { %v562_v30 = vsel %vm560_vm6, %v559_v28, %v472_v12  ;;  %v561_v31 = vsel %vm560_vm6, %v558_v29, %v466_v11  ;;  %v887_v32 = vpop.permute.xlu0 %886  ;;  %v877_v33 = vpop.permute.xlu1 %876 }
 0x160   : > { %v879_v36 = vunpack.i.h.bf16 %v877_v33  ;;  %v878_v37 = vunpack.i.l.bf16 %v877_v33  ;;  %v889_v38 = vunpack.i.h.bf16 %v887_v32  ;;  %v888_v39 = vunpack.i.l.bf16 %v887_v32 }
 0x161   : > { %v564_v40 = vsel %vm563_vm13, %v561_v31, %v488_v4  ;;  %v565_v41 = vsel %vm563_vm13, %v562_v30, %v476_v13 }
 0x162   : > { %v567_v42 = vsel %vm566_vm14, %v564_v40, %v883_v35  ;;  %v568_v43 = vsel %vm566_vm14, %v565_v41, %v884_v34 }
 0x163   : > { %v570_v44 = vsel %vm569_vm15, %v567_v42, %v878_v37  ;;  %v571_v45 = vsel %vm569_vm15, %v568_v43, %v879_v36  ;;  %v897_v46 = vpop.permute.xlu0 %896  ;;  %v892_v47 = vpop.permute.xlu1 %891 }
 0x164   : > { %v899_v48 = vunpack.i.h.bf16 %v897_v46  ;;  %v898_v49 = vunpack.i.l.bf16 %v897_v46  ;;  %v894_v50 = vunpack.i.h.bf16 %v892_v47  ;;  %v893_v51 = vunpack.i.l.bf16 %v892_v47 }
 0x165   : > { %v573_v52 = vsel %vm572_vm0, %v570_v44, %v888_v39  ;;  %v574_v53 = vsel %vm572_vm0, %v571_v45, %v889_v38 }
 0x166   : > { %v576_v54 = vsel %vm575_vm1, %v573_v52, %v893_v51  ;;  %v577_v55 = vsel %vm575_vm1, %v574_v53, %v894_v50 }
 0x167   : > { %v579_v56 = vsel %vm578_vm2, %v576_v54, %v898_v49  ;;  %v580_v57 = vsel %vm578_vm2, %v577_v55, %v899_v48 }
 0x168   : > { %v581_v58 = vpack.c.bf16 %v580_v57, %v579_v56 }
 0x16a   : > { %801 = vmatmul.mubr.msk.bf16.vlgmr.msra.gmra.mxu1 %vm602_vm3, %v581_v58 }
 0x22a   : > { %v643_v60 = vpop.f32.mrf.mxu1 }
 0x22b   : > { %v657_v62 = vmul.f32 %v774_v59, %v643_v60 }
 0x22c   : > { %v802_v63 = vpop.f32.mrf.mxu1 }
 0x22d   : > { %v666_v0 = vadd.f32 %v775_v61, %v657_v62 }
 0x22e   : > { %v646_v2 = vpop.f32.mrf.mxu1 }
 0x22f   : > { %v668_v3 = vmax.f32 %v666_v0, 0.0  ;;  %v658_v4 = vmul.f32 %v774_v59, %v646_v2 }
 0x230   : > { %v803_v5 = vpop.f32.mrf.mxu1 }
 0x231   : > { %v667_v6 = vadd.f32 %v775_v61, %v658_v4  ;;  %674 = vrot.lane.b32.xlu1 %v668_v3, %s975_s9 }
 0x233   : > { %v669_v7 = vmax.f32 %v667_v6, 0.0 }
 0x235   : > { %676 = vrot.lane.b32.xlu0 %v669_v7, %s975_s9 }
 0x2a3   : > { %v675_v8 = vpop.permute.xlu1 %674 }
 0x2a4   : > { %681 = vst.msk [vmem:[%s1104_s16] sm:$0xff] %vm680_vm4, %v675_v8 }
 0x2a7   : > { %v677_v9 = vpop.permute.xlu0 %676 }
 0x2a8   : > { %682 = vst.msk [vmem:[%s1104_s16 + $0x8] sm:$0xff] %vm680_vm4, %v677_v9 }
 0x2a9   : > { %918 = shalt.err (!%p915_p3)
}
 0x2aa   : > { %s919_s29 = scalar_lea.hbm %s1164_s8, 256  ;;  %s923_s19 = scalar_lea.hbm %s1219_s7, 512 }
 0x2ab   : > { %p920_p4 = scmp.ne.s32.totalorder %s1164_s8, %s919_s29  ;;  %p924_p9 = scmp.lt.s32.totalorder %s1164_s8, %s1219_s7 }
 0x2ac   : > { %p925_p10 = scmp.lt.s32.totalorder %s923_s19, %s919_s29 }
 0x2ad   : > { %p921_p7 = pnand %p920_p4, %p1058_p5 }
 0x2ae   : > { %p926_p11 = por %p925_p10, %p924_p9 }
 0x2af   : > { %p922_p8 = pneg %p921_p7 }
 0x2b1   : > { %p927_p12 = pnand %p926_p11, %p922_p8 }
 0x2b3   : > { %930 = shalt.err (!%p927_p12)
}
 0x2b4   : > { %s979_s23 = smov 128  }
 0x2b5   : > { %804 = dma.vmem_to_hbm [thread:$0]  (%p1058_p5), %s1166_s21, 256, %s1164_s8, %s1171_s13, %s979_s23, %s979_s23, %s975_s9  }
 0x2b6 PF: > { %p810_p13 = scmp.ge.s32.totalorder %s965_s27, 2  ;;  %s712_s14 = sand.u32 1, %s953_s24  }
 0x2b7   : > { %s713_s28 = scalar_lea.sflag [#allocation3], %s712_s14 }
 0x2b8   : > { %p807_p0 = pnand %p810_p13, %p1062_p6 }
 0x2ba   : > { %p808_p1 = pneg %p807_p0 }
 0x2bc   : > { %948 = dma.done.wait (%p808_p1), %s713_s28, 256  }
 0x2bd   : > { %950 = vsyncadd (%p808_p1), %s713_s28, 4294967040  ;;  %p17_p2 = scmp.ge.s32.totalorder %s1045_s30, 4   ;;  %s1222_s24 = smov %s957_s25 }
 0x2be   : > { %s1223_s25 = smov %s961_s26  ;;  %s1224_s26 = smov %s1056_s10 }
 0x2bf   : > { %s1225_s27 = smov %s1045_s30  ;;  %19 = sbr.rel (!%p17_p2) target bundleno = 3 (0x3), region = 83 }
 0x2c4   :  { %718 = vsyncpa [#allocation3], 1 }
 0x2c5   :  { %720 = vsyncpa [#allocation3 + $0x1], 1 }

</bundles_post_ra>
